<compile_context>
chip_gen: v5e
topology: v5e:2x2
jax: 0.10.0
libtpu: 0.0.40
codegen_flags: <defaults>
</compile_context>

<pallas_src>
import jax
import jax.numpy as jnp
from jax.experimental import pallas as pl
from jax.experimental.pallas import tpu as pltpu


_LANE = 128                        # output lane alignment
_MAX_PACK = 8                      # never pack more than 8 batch rows per sublane row
_MAX_WEIGHT_BYTES = 2 << 20        # per folded weight matrix (runtime may hold 2x2 buffers)
_VMEM_BUDGET_BYTES = 24 << 20      # working-set target; safe on v5e/v6e and v7x (64 MiB phys)
_VMEM_LIMIT_BYTES = 32 << 20       # explicit scoped-VMEM request (<= physical on all gens)

_PARAM_NAMES = ("W_embed", "b_embed", "T_weight", "T_bias",
                "C_weight", "C_bias", "W_out", "b_out")
_PACK_CACHE = {}


def _round_up(x, m):
    return (x + m - 1) // m * m


# ----------------------------------------------------------------------------
# Kernel: one block of packed batch rows, resident folded weights.
# ----------------------------------------------------------------------------
def _tefn_fused_kernel(x_ref, m_ref, wx_ref, wm_ref, b_ref, o_ref):
    """out = x @ Wx + m @ Wm + bias (fp32 accumulation on the MXU)."""
    acc = jnp.dot(x_ref[...], wx_ref[...], preferred_element_type=jnp.float32)
    acc = acc + jnp.dot(m_ref[...], wm_ref[...], preferred_element_type=jnp.float32)
    o_ref[...] = (acc + b_ref[...]).astype(o_ref.dtype)


# ----------------------------------------------------------------------------
# Parameter folding (kept in fp32; reassociation only).
# ----------------------------------------------------------------------------
def _fold_params(params, *, n_steps, n_features, n_pred_steps, n_pred_features):
    """SaitsEmbedding + BackboneTEFN (fod-summed) + output projection folded
    into one affine map (S*C,) -> (P*Pf,) per input tensor (X and mask)."""
    S, C, P, Pf = n_steps, n_features, n_pred_steps, n_pred_features
    T = S + P
    f32 = jnp.float32

    We = params["W_embed"].astype(f32)      # (T, 2S)
    be = params["b_embed"].astype(f32)      # (T,)
    Tw = params["T_weight"].astype(f32)     # (T, F)
    Tb = params["T_bias"].astype(f32)       # (T, F)
    Cw = params["C_weight"].astype(f32)     # (C, F)
    Cb = params["C_bias"].astype(f32)       # (C, F)
    Wo = params["W_out"].astype(f32)        # (Pf, C)
    bo = params["b_out"].astype(f32)        # (Pf,)

    # Only the last P timesteps of the embedding reach the output.
    WeL = We[T - P:]                        # (P, 2S)
    beL = be[T - P:]                        # (P,)

    # Fold the fod axis (sum over f of the EvidenceMachineKernel params).
    tws = Tw.sum(-1)[T - P:]                # (P,)
    tbs = Tb.sum(-1)[T - P:]                # (P,)
    cws = Cw.sum(-1)                        # (C,)
    cbs = Cb.sum(-1)                        # (C,)

    # G[t, c, p] = (tws[t] + cws[c]) * Wo[p, c]
    G = (tws[:, None, None] + cws[None, :, None]) * Wo.T[None, :, :]   # (P, C, Pf)

    Ax = jnp.einsum("ts,tcp->sctp", WeL[:, :S], G)   # (S, C, P, Pf)
    Am = jnp.einsum("ts,tcp->sctp", WeL[:, S:], G)   # (S, C, P, Pf)
    btot = (beL[:, None] * G.sum(axis=1)
            + tbs[:, None] * Wo.sum(axis=1)[None, :]
            + (Wo @ cbs)[None, :]
            + bo[None, :])                            # (P, Pf)

    return (Ax.reshape(S * C, P * Pf),
            Am.reshape(S * C, P * Pf),
            btot.reshape(P * Pf))


def _choose_pack_factor(B, S, C, P, Pf):
    """Batch-packing factor k, bounded by a weight-VMEM budget.

    * If the output is already lane-dense (P*Pf >= 128) packing buys nothing
      but costs k^2 weight VMEM and k-fold zero FLOPs -> k = 1.
    * Otherwise prefer the smallest k that fills a 128-lane output row; if no
      feasible k reaches 128, take the largest feasible one (most packing)."""
    n0 = P * Pf
    if n0 >= _LANE:
        return 1
    best = 1
    smallest_dense = None
    for k in range(2, _MAX_PACK + 1):
        if B % k:
            continue
        K = k * S * C
        Np = _round_up(k * n0, _LANE)
        if K * Np * 4 > _MAX_WEIGHT_BYTES:      # per-matrix cap (runtime holds up to 4 copies)
            continue
        best = k
        if smallest_dense is None and k * n0 >= _LANE:
            smallest_dense = k
    return smallest_dense if smallest_dense is not None else best


def _packed_params(params, *, n_steps, n_features, n_pred_steps,
                   n_pred_features, k):
    """Folded, kron-packed, lane-padded weights; cached across calls since they
    depend only on (params, k).  kron(I_k, W) keeps packed batches independent;
    padded output columns are exact zeros and are sliced off by the caller."""
    S, C, P, Pf = n_steps, n_features, n_pred_steps, n_pred_features
    key = (tuple(id(params[n]) for n in _PARAM_NAMES), S, C, P, Pf, k)
    hit = _PACK_CACHE.get(key)
    if hit is not None:
        return hit

    Ax, Am, bias = _fold_params(params, n_steps=S, n_features=C,
                                n_pred_steps=P, n_pred_features=Pf)
    n0 = P * Pf
    Np = _round_up(k * n0, _LANE)
    if k > 1:
        eye_k = jnp.eye(k, dtype=jnp.float32)
        Ax = jnp.kron(eye_k, Ax)                 # (k*S*C, k*n0), block-diagonal
        Am = jnp.kron(eye_k, Am)
        bias = jnp.tile(bias, k)
    pad = Np - k * n0
    if pad:
        Ax = jnp.pad(Ax, ((0, 0), (0, pad)))
        Am = jnp.pad(Am, ((0, 0), (0, pad)))
        bias = jnp.pad(bias, (0, pad))
    packed = (Ax, Am, bias[None, :])
    _PACK_CACHE[key] = packed
    return packed


# ----------------------------------------------------------------------------
# Forward wrapper.
# ----------------------------------------------------------------------------
def tefn_forward(X, missing_mask, params, *, n_steps, n_features, n_pred_steps,
                 n_pred_features, n_fod, block_rows=None, training=False):
    if training:
        # The folded fast path is eval-mode only (no dropout / nonstationary norm).
        raise ValueError("tefn_forward implements the eval-mode forward only")
    del n_fod  # the fod axis is folded out exactly (see _fold_params)

    B = X.shape[0]
    S, C, P, Pf = n_steps, n_features, n_pred_steps, n_pred_features

    k = _choose_pack_factor(B, S, C, P, Pf)
    Wx, Wm, b_row = _packed_params(params, n_steps=S, n_features=C,
                                   n_pred_steps=P, n_pred_features=Pf, k=k)
    rows = B // k
    K = k * S * C                 # packed input lane width (full-dim block, may be <128)
    Np = Wx.shape[1]              # packed + 128-padded output lane width

    # Metadata-only reshapes: (B, S, C) contiguous -> (rows, k*S*C).
    x2 = X.reshape(rows, K).astype(jnp.float32)
    m2 = missing_mask.reshape(rows, K).astype(jnp.float32)

    # ---- block rows from an explicit VMEM budget ----------------------------
    # x, m, out are double-buffered by the runtime; the resident weights may be
    # double-buffered too (their index_map is constant, but budget for 2 bufs).
    weight_bytes = 2 * 2 * K * Np * 4
    bias_bytes = 2 * Np * 4
    per_row_bytes = (2 * 2 * K + 2 * Np) * 4
    avail = max(_VMEM_BUDGET_BYTES - weight_bytes - bias_bytes, 64 * 1024)
    r_budget = max(8, avail // per_row_bytes)
    r_target = max(8, (4 << 20) // (K * 4))   # ~4 MiB input blocks reach the HBM roofline
    R = min(rows, r_budget, r_target)
    if block_rows is not None:
        R = min(R, block_rows)
    if rows >= 16:
        # Keep >= 2 grid steps so the "parallel" axis actually splits across
        # the two v7x TensorCores instead of collapsing to a 1-step grid.
        R = min(R, pl.cdiv(rows, 2))
    if R < rows:
        R = max(8, (R // 8) * 8)              # sublane-aligned blocks
    else:
        R = rows
    grid = (pl.cdiv(rows, R),)

    out2 = pl.pallas_call(
        _tefn_fused_kernel,
        out_shape=jax.ShapeDtypeStruct((rows, Np), jnp.float32),
        grid=grid,
        in_specs=[
            pl.BlockSpec((R, K), lambda i: (i, 0)),     # packed X rows
            pl.BlockSpec((R, K), lambda i: (i, 0)),     # packed mask rows
            pl.BlockSpec((K, Np), lambda i: (0, 0)),    # folded X weight (resident)
            pl.BlockSpec((K, Np), lambda i: (0, 0)),    # folded mask weight (resident)
            pl.BlockSpec((1, Np), lambda i: (0, 0)),    # folded bias (resident)
        ],
        out_specs=pl.BlockSpec((R, Np), lambda i: (i, 0)),
        compiler_params=pltpu.CompilerParams(
            dimension_semantics=("parallel",),
            vmem_limit_bytes=_VMEM_LIMIT_BYTES),
    )(x2, m2, Wx, Wm, b_row)

    # Drop the lane-padding columns (exact zeros) and unpack the batch.
    return out2[:, :k * P * Pf].reshape(B, P, Pf)


# ----------------------------------------------------------------------------
# Pure-JAX reference mirroring the (unfolded) PyTorch forward.
# ----------------------------------------------------------------------------
def tefn_reference(X, missing_mask, params, *, n_pred_steps):
    xm = jnp.concatenate(
        [jnp.transpose(X, (0, 2, 1)), jnp.transpose(missing_mask, (0, 2, 1))], axis=-1
    )                                                          # (B, C, 2S)
    enc = xm @ params["W_embed"].T + params["b_embed"]         # (B, C, T)
    enc = jnp.transpose(enc, (0, 2, 1))                        # (B, T, C)
    t_out = enc[..., None] * params["T_weight"][None, :, None, :] \
        + params["T_bias"][None, :, None, :]
    c_out = enc[..., None] * params["C_weight"][None, None, :, :] \
        + params["C_bias"][None, None, :, :]
    fused = (t_out + c_out).sum(-1)                            # (B, T, C)
    out = fused @ params["W_out"].T + params["b_out"]          # (B, T, Pf)
    return out[:, -n_pred_steps:, :]


if __name__ == "__main__":
    n_steps = 8
    n_features = 4
    n_pred_steps = 4
    n_pred_features = 3
    n_fod = 2
    T_total = n_steps + n_pred_steps
    F = 2 ** n_fod

    key = jax.random.PRNGKey(0)
    ks = jax.random.split(key, 10)

    params = {
        "W_embed": jax.random.uniform(ks[0], (T_total, 2 * n_steps), jnp.float32, -0.3, 0.3),
        "b_embed": jax.random.uniform(ks[1], (T_total,), jnp.float32, -0.3, 0.3),
        "T_weight": jax.random.uniform(ks[2], (T_total, F), jnp.float32),
        "T_bias": jax.random.uniform(ks[3], (T_total, F), jnp.float32),
        "C_weight": jax.random.uniform(ks[4], (n_features, F), jnp.float32),
        "C_bias": jax.random.uniform(ks[5], (n_features, F), jnp.float32),
        "W_out": jax.random.uniform(ks[6], (n_pred_features, n_features), jnp.float32, -0.5, 0.5),
        "b_out": jax.random.uniform(ks[7], (n_pred_features,), jnp.float32, -0.5, 0.5),
    }

    common = dict(n_steps=n_steps, n_features=n_features, n_pred_steps=n_pred_steps,
                  n_pred_features=n_pred_features, n_fod=n_fod)

    # --- check 1: tiny batch (single-row packed grid) -------------------------
    B = 2
    X = jax.random.normal(ks[8], (B, n_steps, n_features), jnp.float32)
    M = (jax.random.uniform(ks[9], (B, n_steps, n_features)) > 0.2).astype(jnp.float32)
    X = X * M  # observed values only, as in pypots
    out = jax.block_until_ready(tefn_forward(X, M, params, **common))
    ref = tefn_reference(X, M, params, n_pred_steps=n_pred_steps)
    assert out.shape == (B, n_pred_steps, n_pred_features)
    assert jnp.allclose(out, ref, atol=1e-4, rtol=1e-4), "mismatch vs reference (B=2)"

    # --- check 2: larger batch -> pack-8, >=2 "parallel" grid steps ----------
    B2 = 128
    k2 = jax.random.split(jax.random.PRNGKey(1), 2)
    X2 = jax.random.normal(k2[0], (B2, n_steps, n_features), jnp.float32)
    M2 = (jax.random.uniform(k2[1], (B2, n_steps, n_features)) > 0.2).astype(jnp.float32)
    X2 = X2 * M2
    out2 = jax.block_until_ready(tefn_forward(X2, M2, params, **common))
    ref2 = tefn_reference(X2, M2, params, n_pred_steps=n_pred_steps)
    assert out2.shape == (B2, n_pred_steps, n_pred_features)
    assert jnp.allclose(out2, ref2, atol=1e-4, rtol=1e-4), "mismatch vs reference (B=128)"

    # --- check 3: ragged batch (rows % R != 0 -> masked last block) ----------
    B3 = 100
    k3 = jax.random.split(jax.random.PRNGKey(2), 2)
    X3 = jax.random.normal(k3[0], (B3, n_steps, n_features), jnp.float32)
    M3 = (jax.random.uniform(k3[1], (B3, n_steps, n_features)) > 0.2).astype(jnp.float32)
    X3 = X3 * M3
    out3 = jax.block_until_ready(tefn_forward(X3, M3, params, **common))
    ref3 = tefn_reference(X3, M3, params, n_pred_steps=n_pred_steps)
    assert out3.shape == (B3, n_pred_steps, n_pred_features)
    assert jnp.all(jnp.isfinite(out3)), "NaN/Inf contamination in ragged batch"
    assert jnp.allclose(out3, ref3, atol=1e-4, rtol=1e-4), "mismatch vs reference (B=100)"

    print("KERNEL_OK")
</pallas_src>

<mosaic_0001>
module attributes {stable_mosaic.version = 11 : i64} {
  func.func @_tefn_fused_kernel(%arg0: i32, %arg1: memref<1x64xf32, #tpu.memory_space<vmem>>, %arg2: memref<1x64xf32, #tpu.memory_space<vmem>>, %arg3: memref<64x128xf32, #tpu.memory_space<vmem>>, %arg4: memref<64x128xf32, #tpu.memory_space<vmem>>, %arg5: memref<1x128xf32, #tpu.memory_space<vmem>>, %arg6: memref<1x128xf32, #tpu.memory_space<vmem>>) attributes {dimension_semantics = [#tpu.dimension_semantics<parallel>], iteration_bounds = array<i64: 1>, scalar_prefetch = 0 : i64, scratch_operands = 0 : i64, tpu.core_type = #tpu.core_type<tc>, window_params = [{transform_indices = @transform_0, window_bounds = array<i64: 1, 64>}, {transform_indices = @transform_1, window_bounds = array<i64: 1, 64>}, {pipeline_mode = #tpu.pipeline_mode<synchronous>, transform_indices = @transform_2, window_bounds = array<i64: 64, 128>}, {pipeline_mode = #tpu.pipeline_mode<synchronous>, transform_indices = @transform_3, window_bounds = array<i64: 64, 128>}, {pipeline_mode = #tpu.pipeline_mode<synchronous>, transform_indices = @transform_4, window_bounds = array<i64: 1, 128>}, {transform_indices = @transform_5, window_bounds = array<i64: 1, 128>}]} {
    %c0 = arith.constant 0 : index
    %c0_0 = arith.constant 0 : index
    %0 = vector.load %arg1[%c0, %c0_0] : memref<1x64xf32, #tpu.memory_space<vmem>>, vector<1x64xf32>
    %c0_1 = arith.constant 0 : index
    %c0_2 = arith.constant 0 : index
    %1 = vector.load %arg3[%c0_1, %c0_2] : memref<64x128xf32, #tpu.memory_space<vmem>>, vector<64x128xf32>
    %cst = arith.constant dense<0.000000e+00> : vector<1x128xf32>
    %2 = tpu.matmul %0, %1, %cst {dimension_numbers = #tpu.dot_dimension_numbers<[1], [0], [0], [1], [0, 0, 1, 1], [], []>} : vector<1x64xf32>, vector<64x128xf32>, vector<1x128xf32> -> vector<1x128xf32>
    %c0_3 = arith.constant 0 : index
    %c0_4 = arith.constant 0 : index
    %3 = vector.load %arg2[%c0_3, %c0_4] : memref<1x64xf32, #tpu.memory_space<vmem>>, vector<1x64xf32>
    %c0_5 = arith.constant 0 : index
    %c0_6 = arith.constant 0 : index
    %4 = vector.load %arg4[%c0_5, %c0_6] : memref<64x128xf32, #tpu.memory_space<vmem>>, vector<64x128xf32>
    %cst_7 = arith.constant dense<0.000000e+00> : vector<1x128xf32>
    %5 = tpu.matmul %3, %4, %cst_7 {dimension_numbers = #tpu.dot_dimension_numbers<[1], [0], [0], [1], [0, 0, 1, 1], [], []>} : vector<1x64xf32>, vector<64x128xf32>, vector<1x128xf32> -> vector<1x128xf32>
    %6 = arith.addf %2, %5 : vector<1x128xf32>
    %c0_8 = arith.constant 0 : index
    %c0_9 = arith.constant 0 : index
    %7 = vector.load %arg5[%c0_8, %c0_9] : memref<1x128xf32, #tpu.memory_space<vmem>>, vector<1x128xf32>
    %8 = arith.addf %6, %7 : vector<1x128xf32>
    %c0_10 = arith.constant 0 : index
    %c0_11 = arith.constant 0 : index
    %9 = vector.load %arg6[%c0_10, %c0_11] : memref<1x128xf32, #tpu.memory_space<vmem>>, vector<1x128xf32>
    tpu.vector_store %arg6[%c0_10, %c0_11], %8 {strides = array<i32>} : memref<1x128xf32, #tpu.memory_space<vmem>>, vector<1x128xf32>,
    return
  }
  func.func @transform_0(%arg0: i32) -> (i32, i32) {
    %c0_i32 = arith.constant 0 : i32
    %c0_i32_0 = arith.constant 0 : i32
    return %arg0, %c0_i32 : i32, i32
  }
  func.func @transform_1(%arg0: i32) -> (i32, i32) {
    %c0_i32 = arith.constant 0 : i32
    %c0_i32_0 = arith.constant 0 : i32
    return %arg0, %c0_i32 : i32, i32
  }
  func.func @transform_2(%arg0: i32) -> (i32, i32) {
    %c0_i32 = arith.constant 0 : i32
    %c0_i32_0 = arith.constant 0 : i32
    %c0_i32_1 = arith.constant 0 : i32
    return %c0_i32, %c0_i32_0 : i32, i32
  }
  func.func @transform_3(%arg0: i32) -> (i32, i32) {
    %c0_i32 = arith.constant 0 : i32
    %c0_i32_0 = arith.constant 0 : i32
    %c0_i32_1 = arith.constant 0 : i32
    return %c0_i32, %c0_i32_0 : i32, i32
  }
  func.func @transform_4(%arg0: i32) -> (i32, i32) {
    %c0_i32 = arith.constant 0 : i32
    %c0_i32_0 = arith.constant 0 : i32
    %c0_i32_1 = arith.constant 0 : i32
    return %c0_i32, %c0_i32_0 : i32, i32
  }
  func.func @transform_5(%arg0: i32) -> (i32, i32) {
    %c0_i32 = arith.constant 0 : i32
    %c0_i32_0 = arith.constant 0 : i32
    return %arg0, %c0_i32 : i32, i32
  }
}

</mosaic_0001>

<bundles_post_ra>
// kernel: tpu_custom_call.1
= control target key start
LH: loop header
LB: loop body
LE: loop exit
PB: predicated region body
PF: predicated region fallthrough
CT: control target
= control target key end

     0   :  { %10 = vsyncpa [#allocation3], 0  ;;  %s359_s0 = inlined_call_operand.hbm [shape: f32[1,64], index: 0, kind: input, shape index: {}]   ;;  %s360_s1 = inlined_call_operand.hbm [shape: f32[1,64], index: 1, kind: input, shape index: {}]   ;;  %s361_s2 = inlined_call_operand.hbm [shape: f32[64,128], index: 2, kind: input, shape index: {}]   ;;  %s362_s3 = inlined_call_operand.hbm [shape: f32[64,128], index: 3, kind: input, shape index: {}]   ;;  %s363_s4 = inlined_call_operand.vmem [shape: f32[1,128], index: 4, kind: input, shape index: {}]   ;;  %s364_s5 = inlined_call_operand.hbm [shape: f32[1,128], index: 5, kind: output, shape index: {}]  }
   0x1   :  { %11 = vsyncpa [#allocation6], 0 }
   0x2   :  { %12 = vsyncpa [#allocation9], 0  ;;  %s30_s20 = sshll.u32 %s360_s1, 4  ;;  %s31_s20 = int_to_ptr.hbm [resolvable:$true] %s30_s20 }
   0x3   :  { %13 = vsyncpa [#allocation4], 0  ;;  %s304_s21 = smov [#allocation5]   ;;  %s19_s25 = sshll.u32 %s359_s0, 4  ;;  %s20_s25 = int_to_ptr.hbm [resolvable:$true] %s19_s25 }
   0x4   :  { %s32_s22 = sshll.u32 %s304_s21, 4  ;;  %s305_s26 = smov [#allocation2]   ;;  %s33_s22 = int_to_ptr.vmem [resolvable:$true] %s32_s22 }
   0x5   :  { %35 = dma.hbm_to_vmem [thread:$0]  %s31_s20, 16, %s33_s22, [#allocation6]  }
   0x6   :  { %s21_s27 = sshll.u32 %s305_s26, 4  ;;  %s40_s30 = sshll.u32 %s361_s2, 4  ;;  %s22_s27 = int_to_ptr.vmem [resolvable:$true] %s21_s27  ;;  %s41_s30 = int_to_ptr.hbm [resolvable:$true] %s40_s30 }
   0x7   :  { %24 = dma.hbm_to_vmem [thread:$0]  %s20_s25, 16, %s22_s27, [#allocation3]  }
   0x8   :  { %s306_s1 = smov [#allocation7]   ;;  %s53_s9 = sshll.u32 %s362_s3, 4  ;;  %s54_s9 = int_to_ptr.hbm [resolvable:$true] %s53_s9 }
   0x9   :  { %s42_s6 = sshll.u32 %s306_s1, 4  ;;  %s307_s10 = smov 128   ;;  %s43_s6 = int_to_ptr.vmem [resolvable:$true] %s42_s6 }
   0xa   :  { %s308_s0 = smov 8   ;;  %s309_s11 = smov [#allocation8]  }
   0xb   :  { %48 = dma.hbm_to_vmem [thread:$0]  %s41_s30, 1024, %s43_s6, [#allocation6], %s307_s10, %s307_s10, %s308_s0  }
   0xc   :  { %s55_s12 = sshll.u32 %s309_s11, 4  ;;  %s56_s12 = int_to_ptr.vmem [resolvable:$true] %s55_s12 }
   0xd   :  { %61 = dma.hbm_to_vmem [thread:$0]  %s54_s9, 1024, %s56_s12, [#allocation9], %s307_s10, %s307_s10, %s308_s0  }
   0xe   :  { %296 = dma.done.wait [#allocation3], 16  }
   0xf   :  { %297 = vsyncadd [#allocation3], 4294967280 }
  0x10   :  { %298 = dma.done.wait [#allocation6], 1040  }
  0x11   :  { %299 = vsyncadd [#allocation6], 4294966256 }
  0x12   :  { %300 = dma.done.wait [#allocation9], 1024  }
  0x13   :  { %301 = vsyncadd [#allocation9], 4294966272  ;;  %v97_v0 = vld [vmem:[#allocation8 + $0x38] sm:$0xff]  ;;  %v96_v2 = vld [vmem:[#allocation8 + $0x30] sm:$0xff]  ;;  %vm98_vm0 = vcmask 523264   ;;  %s310_s13 = smov [#allocation10]  }
  0x14   :  { %v88_v1 = vld [vmem:[#allocation7 + $0x38] sm:$0xff]  ;;  %110 = vmatpush.msra.mxu0 %v97_v0  ;;  %v87_v3 = vld [vmem:[#allocation7 + $0x30] sm:$0xff]  ;;  %v95_v4 = vld [vmem:[#allocation8 + $0x28] sm:$0xff]  ;;  %s153_s14 = sshll.u32 %s310_s13, 4  ;;  %s155_s17 = sshll.u32 %s364_s5, 4  ;;  %s154_s14 = int_to_ptr.vmem [resolvable:$true] %s153_s14  ;;  %s156_s17 = int_to_ptr.hbm [resolvable:$true] %s155_s17 }
  0x15   :  { %133 = vmatpush.msra.mxu1 %v88_v1  ;;  %v86_v5 = vld [vmem:[#allocation7 + $0x28] sm:$0xff]  ;;  %v94_v6 = vld [vmem:[#allocation8 + $0x20] sm:$0xff]  ;;  %v93_v8 = vld [vmem:[#allocation8 + $0x18] sm:$0xff] }
  0x16   :  { %111 = vmatpush.msra.mxu0 %v96_v2  ;;  %v85_v7 = vld [vmem:[#allocation7 + $0x20] sm:$0xff]  ;;  %v84_v9 = vld [vmem:[#allocation7 + $0x18] sm:$0xff]  ;;  %v92_v10 = vld [vmem:[#allocation8 + $0x10] sm:$0xff] }
  0x17   :  { %134 = vmatpush.msra.mxu1 %v87_v3  ;;  %v83_v11 = vld [vmem:[#allocation7 + $0x10] sm:$0xff]  ;;  %v91_v12 = vld [vmem:[#allocation8 + $0x8] sm:$0xff]  ;;  %v90_v14 = vld [vmem:[#allocation8] sm:$0xff] }
  0x18   :  { %112 = vmatpush.msra.mxu0 %v95_v4  ;;  %v82_v13 = vld [vmem:[#allocation7 + $0x8] sm:$0xff]  ;;  %v81_v15 = vld [vmem:[#allocation7] sm:$0xff]  ;;  %v89_v16 = vld [vmem:[#allocation5] sm:$0x1] }
  0x19   :  { %135 = vmatpush.msra.mxu1 %v86_v5  ;;  %v80_v17 = vld [vmem:[#allocation2] sm:$0x1] }
  0x1a   :  { %113 = vmatpush.msra.mxu0 %v94_v6  ;;  %v145_v20 = vld [vmem:[%s363_s4] sm:$0x1] }
  0x1b   :  { %136 = vmatpush.msra.mxu1 %v85_v7 }
  0x1c   :  { %114 = vmatpush.msra.mxu0 %v93_v8 }
  0x1d   :  { %137 = vmatpush.msra.mxu1 %v84_v9 }
  0x1e   :  { %115 = vmatpush.msra.mxu0 %v92_v10 }
  0x1f   :  { %138 = vmatpush.msra.mxu1 %v83_v11 }
  0x20   :  { %116 = vmatpush.msra.mxu0 %v91_v12 }
  0x21   :  { %139 = vmatpush.msra.mxu1 %v82_v13 }
  0x22   :  { %117 = vmatpush.msra.mxu0 %v90_v14 }
  0x23   :  { %140 = vmatpush.msra.mxu1 %v81_v15  ;;  %167 = vmatmul.msk.f32.vlgmr.msra.gmra.mxu0 %vm98_vm0, %v89_v16 }
  0x24   :  { %168 = vmatmul.msk.f32.vlgmr.msra.gmra.mxu1 %vm98_vm0, %v80_v17 }
  0xa0   :  { %v119_v18 = vpop.f32.mrf.mxu0 }
  0xa1   :  { %v142_v19 = vpop.f32.mrf.mxu1 }
  0xa2   :  { %v143_v21 = vadd.f32 %v142_v19, %v119_v18 }
  0xa4   :  { %v146_v22 = vadd.f32 %v145_v20, %v143_v21 }
  0xa6   :  { %147 = vst [vmem:[#allocation10] sm:$0x1] %v146_v22 }
  0xa7   :  { %158 = dma.vmem_to_hbm [thread:$0]  %s154_s14, 16, %s156_s17, [#allocation4]  }
  0xa8   :  { %302 = dma.done.wait [#allocation4], 16  }
  0xa9   :  { %303 = vsyncadd [#allocation4], 4294967280 }
  0xaa   :  { %163 = vsyncpa [#allocation3], 1 }
  0xab   :  { %164 = vsyncpa [#allocation6], 1 }
  0xac   :  { %165 = vsyncpa [#allocation9], 1 }
  0xad   :  { %166 = vsyncpa [#allocation4], 1 }

</bundles_post_ra>
